<compile_context>
chip_gen: v7x
topology: tpu7x:2x2x1
jax: 0.10.0
libtpu: 0.0.40
codegen_flags: <defaults>
</compile_context>

<pallas_src>
import math

import jax
import jax.numpy as jnp
from jax.experimental import pallas as pl
from jax.experimental.pallas import tpu as pltpu


def _autotomo_kernel(x_ref, w1_ref, b1_ref, w2_ref, b2_ref, w3_ref, b3_ref, o_ref):
    # Layer 1: Linear + ReLU  (bf16 MXU inputs, f32 accumulate, f32 epilogue)
    h1 = jnp.dot(x_ref[...], w1_ref[...], preferred_element_type=jnp.float32)
    h1 = jnp.maximum(h1 + b1_ref[...], 0.0)

    # Layer 2: Linear + ReLU
    h2 = jnp.dot(h1.astype(jnp.bfloat16), w2_ref[...],
                 preferred_element_type=jnp.float32)
    h2 = jnp.maximum(h2 + b2_ref[...], 0.0)

    # Layer 3: Linear + Sigmoid (exp and reciprocal both on the EUP)
    z = jnp.dot(h2.astype(jnp.bfloat16), w3_ref[...],
                preferred_element_type=jnp.float32) + b3_ref[...]
    o_ref[...] = pl.reciprocal(1.0 + jnp.exp(-z), approx=True).astype(o_ref.dtype)


def _round_up(n, m):
    return ((n + m - 1) // m) * m


def _choose_tiling(B, tile_b, min_tiles):
    """Divisor-aware batch tiling: minimal padding, >= min_tiles grid steps."""
    # Never force more tiles than 8-row chunks of the real batch.
    min_tiles = max(1, min(min_tiles, pl.cdiv(B, 8)))
    n = max(min_tiles, pl.cdiv(B, tile_b))
    tb = _round_up(pl.cdiv(B, n), 8)          # sublane-aligned, minimal padding
    n = max(min_tiles, pl.cdiv(B, tb))
    return tb, n


def autotomo_forward(x, params, *, tile_b=512, min_tiles=2, out_dtype=jnp.float32):
    """x: (B, input_size). params: dict of bf16 transposed weights + f32 biases.

    min_tiles: keep >=2 so v7x megacore can shard the batch axis (use 4 on v7x
    so each TensorCore keeps 2 pipelined steps); irrelevant on v5e/v6e.
    out_dtype: jnp.float32 (default) or jnp.bfloat16 to halve output HBM bytes.
    """
    w1, b1, w2, b2, w3, b3 = (
        params["w1"], params["b1"], params["w2"],
        params["b2"], params["w3"], params["b3"],
    )
    B, in_size = x.shape
    h1_size = w1.shape[1]
    h2_size = w2.shape[1]
    out_size = w3.shape[1]

    # bf16 x stream: half the DMA bytes, no in-kernel cast on the VPU.
    x = x.astype(jnp.bfloat16)

    tb, n_tiles = _choose_tiling(B, tile_b, min_tiles)
    b_pad = tb * n_tiles
    if b_pad != B:
        x = jnp.pad(x, ((0, b_pad - B), (0, 0)))

    # Weights/biases: constant index_map -> DMA'd once, resident in VMEM while
    # the x/out tiles are double-buffered against compute.
    resident = lambda a: pl.BlockSpec(a.shape, lambda i: (0,) * a.ndim)

    itemsize = lambda a: a.size * jnp.dtype(a.dtype).itemsize
    cost = pl.CostEstimate(
        flops=2 * b_pad * (in_size * h1_size + h1_size * h2_size
                           + h2_size * out_size),
        transcendentals=b_pad * out_size,
        bytes_accessed=(itemsize(x)
                        + sum(itemsize(a) for a in (w1, b1, w2, b2, w3, b3))
                        + b_pad * out_size * jnp.dtype(out_dtype).itemsize),
    )

    out = pl.pallas_call(
        _autotomo_kernel,
        out_shape=jax.ShapeDtypeStruct((b_pad, out_size), out_dtype),
        grid=(n_tiles,),
        in_specs=[
            pl.BlockSpec((tb, in_size), lambda i: (i, 0)),   # x: tiled over batch
            resident(w1), resident(b1),
            resident(w2), resident(b2),
            resident(w3), resident(b3),
        ],
        out_specs=pl.BlockSpec((tb, out_size), lambda i: (i, 0)),
        compiler_params=pltpu.CompilerParams(
            dimension_semantics=("parallel",)),
        cost_estimate=cost,
    )(x, w1, b1, w2, b2, w3, b3)

    return out[:B]


def init_autotomo_params(key, input_size, hidden_size_1, hidden_size_2, output_size):
    """Init matching nn.Linear's U(-1/sqrt(fan_in), 1/sqrt(fan_in)).

    Weights are stored transposed, shape (fan_in, fan_out), and cast to bf16
    for the MXU; biases are f32, shape (1, fan_out), broadcasting over batch.
    """
    dims = [(input_size, hidden_size_1),
            (hidden_size_1, hidden_size_2),
            (hidden_size_2, output_size)]
    params = {}
    keys = jax.random.split(key, 6)
    for i, (fan_in, fan_out) in enumerate(dims):
        bound = 1.0 / math.sqrt(fan_in)
        w = jax.random.uniform(keys[2 * i], (fan_in, fan_out), jnp.float32,
                               -bound, bound)
        b = jax.random.uniform(keys[2 * i + 1], (1, fan_out), jnp.float32,
                               -bound, bound)
        params[f"w{i+1}"] = w.astype(jnp.bfloat16)
        params[f"b{i+1}"] = b
    return params


if __name__ == "__main__":
    # AutoTomo maps a lower-dimensional link-load vector to a higher-dim OD
    # flow vector.  Batch is large enough to exercise >1 grid step.
    batch = 512
    input_size = 16      # link loads (low-dim)
    hidden_size_1 = 64
    hidden_size_2 = 64
    output_size = 128    # OD flows (high-dim); lane-dense output stores

    key = jax.random.PRNGKey(0)
    k_x, k_p = jax.random.split(key)
    x = jax.random.normal(k_x, (batch, input_size), jnp.float32)
    params = init_autotomo_params(k_p, input_size, hidden_size_1,
                                  hidden_size_2, output_size)

    # f32-output path (default) and bf16-output path (halved output HBM bytes).
    out = jax.block_until_ready(autotomo_forward(x, params))
    out_bf16 = jax.block_until_ready(
        autotomo_forward(x, params, out_dtype=jnp.bfloat16))

    # Reference in plain JAX using the same bf16-input / f32-accumulate math;
    # tolerance covers the EUP approximate-reciprocal sigmoid (and bf16 output
    # rounding for the bf16 path).
    def lin(a, w, b):
        return jnp.dot(a.astype(jnp.bfloat16), w,
                       preferred_element_type=jnp.float32) + b
    h = jnp.maximum(lin(x, params["w1"], params["b1"]), 0.0)
    h = jnp.maximum(lin(h, params["w2"], params["b2"]), 0.0)
    ref = jax.nn.sigmoid(lin(h, params["w3"], params["b3"]))

    assert out.shape == (batch, output_size)
    assert jnp.allclose(out, ref, atol=5e-3, rtol=5e-3), (
        float(jnp.max(jnp.abs(out - ref))))
    assert out_bf16.shape == (batch, output_size)
    assert jnp.allclose(out_bf16.astype(jnp.float32), ref,
                        atol=2e-2, rtol=2e-2), (
        float(jnp.max(jnp.abs(out_bf16.astype(jnp.float32) - ref))))

    print("KERNEL_OK")
</pallas_src>

<mosaic_0001>
module attributes {stable_mosaic.version = 11 : i64} {
  func.func @_autotomo_kernel(%arg0: i32, %arg1: memref<256x16xbf16, #tpu.memory_space<vmem>>, %arg2: memref<16x64xbf16, #tpu.memory_space<vmem>>, %arg3: memref<1x64xf32, #tpu.memory_space<vmem>>, %arg4: memref<64x64xbf16, #tpu.memory_space<vmem>>, %arg5: memref<1x64xf32, #tpu.memory_space<vmem>>, %arg6: memref<64x128xbf16, #tpu.memory_space<vmem>>, %arg7: memref<1x128xf32, #tpu.memory_space<vmem>>, %arg8: memref<256x128xf32, #tpu.memory_space<vmem>>) attributes {dimension_semantics = [#tpu.dimension_semantics<parallel>], iteration_bounds = array<i64: 2>, scalar_prefetch = 0 : i64, scratch_operands = 0 : i64, tpu.core_type = #tpu.core_type<tc>, window_params = [{transform_indices = @transform_0, window_bounds = array<i64: 256, 16>}, {pipeline_mode = #tpu.pipeline_mode<synchronous>, transform_indices = @transform_1, window_bounds = array<i64: 16, 64>}, {pipeline_mode = #tpu.pipeline_mode<synchronous>, transform_indices = @transform_2, window_bounds = array<i64: 1, 64>}, {pipeline_mode = #tpu.pipeline_mode<synchronous>, transform_indices = @transform_3, window_bounds = array<i64: 64, 64>}, {pipeline_mode = #tpu.pipeline_mode<synchronous>, transform_indices = @transform_4, window_bounds = array<i64: 1, 64>}, {pipeline_mode = #tpu.pipeline_mode<synchronous>, transform_indices = @transform_5, window_bounds = array<i64: 64, 128>}, {pipeline_mode = #tpu.pipeline_mode<synchronous>, transform_indices = @transform_6, window_bounds = array<i64: 1, 128>}, {transform_indices = @transform_7, window_bounds = array<i64: 256, 128>}]} {
    %c0 = arith.constant 0 : index
    %c0_0 = arith.constant 0 : index
    %0 = vector.load %arg1[%c0, %c0_0] : memref<256x16xbf16, #tpu.memory_space<vmem>>, vector<256x16xbf16>
    %c0_1 = arith.constant 0 : index
    %c0_2 = arith.constant 0 : index
    %1 = vector.load %arg2[%c0_1, %c0_2] : memref<16x64xbf16, #tpu.memory_space<vmem>>, vector<16x64xbf16>
    %cst = arith.constant dense<0.000000e+00> : vector<256x64xf32>
    %2 = tpu.matmul %0, %1, %cst {dimension_numbers = #tpu.dot_dimension_numbers<[1], [0], [0], [1], [0, 0, 1, 1], [], []>} : vector<256x16xbf16>, vector<16x64xbf16>, vector<256x64xf32> -> vector<256x64xf32>
    %c0_3 = arith.constant 0 : index
    %c0_4 = arith.constant 0 : index
    %3 = vector.load %arg3[%c0_3, %c0_4] : memref<1x64xf32, #tpu.memory_space<vmem>>, vector<1x64xf32>
    %4 = vector.broadcast %3 : vector<1x64xf32> to vector<256x64xf32>
    %5 = arith.addf %2, %4 : vector<256x64xf32>
    %cst_5 = arith.constant 0.000000e+00 : f32
    %6 = vector.broadcast %cst_5 : f32 to vector<256x64xf32>
    %7 = arith.maximumf %5, %6 : vector<256x64xf32>
    %8 = arith.truncf %7 : vector<256x64xf32> to vector<256x64xbf16>
    %c0_6 = arith.constant 0 : index
    %c0_7 = arith.constant 0 : index
    %9 = vector.load %arg4[%c0_6, %c0_7] : memref<64x64xbf16, #tpu.memory_space<vmem>>, vector<64x64xbf16>
    %cst_8 = arith.constant dense<0.000000e+00> : vector<256x64xf32>
    %10 = tpu.matmul %8, %9, %cst_8 {dimension_numbers = #tpu.dot_dimension_numbers<[1], [0], [0], [1], [0, 0, 1, 1], [], []>} : vector<256x64xbf16>, vector<64x64xbf16>, vector<256x64xf32> -> vector<256x64xf32>
    %c0_9 = arith.constant 0 : index
    %c0_10 = arith.constant 0 : index
    %11 = vector.load %arg5[%c0_9, %c0_10] : memref<1x64xf32, #tpu.memory_space<vmem>>, vector<1x64xf32>
    %12 = vector.broadcast %11 : vector<1x64xf32> to vector<256x64xf32>
    %13 = arith.addf %10, %12 : vector<256x64xf32>
    %cst_11 = arith.constant 0.000000e+00 : f32
    %14 = vector.broadcast %cst_11 : f32 to vector<256x64xf32>
    %15 = arith.maximumf %13, %14 : vector<256x64xf32>
    %16 = arith.truncf %15 : vector<256x64xf32> to vector<256x64xbf16>
    %c0_12 = arith.constant 0 : index
    %c0_13 = arith.constant 0 : index
    %17 = vector.load %arg6[%c0_12, %c0_13] : memref<64x128xbf16, #tpu.memory_space<vmem>>, vector<64x128xbf16>
    %cst_14 = arith.constant dense<0.000000e+00> : vector<256x128xf32>
    %18 = tpu.matmul %16, %17, %cst_14 {dimension_numbers = #tpu.dot_dimension_numbers<[1], [0], [0], [1], [0, 0, 1, 1], [], []>} : vector<256x64xbf16>, vector<64x128xbf16>, vector<256x128xf32> -> vector<256x128xf32>
    %c0_15 = arith.constant 0 : index
    %c0_16 = arith.constant 0 : index
    %19 = vector.load %arg7[%c0_15, %c0_16] : memref<1x128xf32, #tpu.memory_space<vmem>>, vector<1x128xf32>
    %20 = vector.broadcast %19 : vector<1x128xf32> to vector<256x128xf32>
    %21 = arith.addf %18, %20 : vector<256x128xf32>
    %cst_17 = arith.constant 0.000000e+00 : f32
    %22 = vector.broadcast %cst_17 : f32 to vector<256x128xf32>
    %23 = arith.subf %22, %21 : vector<256x128xf32>
    %24 = math.exp %23 : vector<256x128xf32>
    %cst_18 = arith.constant 1.000000e+00 : f32
    %25 = vector.broadcast %cst_18 : f32 to vector<256x128xf32>
    %26 = arith.addf %25, %24 : vector<256x128xf32>
    %27 = tpu.reciprocal %26 {approx = true} : vector<256x128xf32> -> vector<256x128xf32>
    %c0_19 = arith.constant 0 : index
    %c0_20 = arith.constant 0 : index
    %28 = vector.load %arg8[%c0_19, %c0_20] : memref<256x128xf32, #tpu.memory_space<vmem>>, vector<256x128xf32>
    tpu.vector_store %arg8[%c0_19, %c0_20], %27 {strides = array<i32>} : memref<256x128xf32, #tpu.memory_space<vmem>>, vector<256x128xf32>,
    return
  }
  func.func @transform_0(%arg0: i32) -> (i32, i32) {
    %c0_i32 = arith.constant 0 : i32
    %c0_i32_0 = arith.constant 0 : i32
    return %arg0, %c0_i32 : i32, i32
  }
  func.func @transform_1(%arg0: i32) -> (i32, i32) {
    %c0_i32 = arith.constant 0 : i32
    %c0_i32_0 = arith.constant 0 : i32
    %c0_i32_1 = arith.constant 0 : i32
    return %c0_i32, %c0_i32_0 : i32, i32
  }
  func.func @transform_2(%arg0: i32) -> (i32, i32) {
    %c0_i32 = arith.constant 0 : i32
    %c0_i32_0 = arith.constant 0 : i32
    %c0_i32_1 = arith.constant 0 : i32
    return %c0_i32, %c0_i32_0 : i32, i32
  }
  func.func @transform_3(%arg0: i32) -> (i32, i32) {
    %c0_i32 = arith.constant 0 : i32
    %c0_i32_0 = arith.constant 0 : i32
    %c0_i32_1 = arith.constant 0 : i32
    return %c0_i32, %c0_i32_0 : i32, i32
  }
  func.func @transform_4(%arg0: i32) -> (i32, i32) {
    %c0_i32 = arith.constant 0 : i32
    %c0_i32_0 = arith.constant 0 : i32
    %c0_i32_1 = arith.constant 0 : i32
    return %c0_i32, %c0_i32_0 : i32, i32
  }
  func.func @transform_5(%arg0: i32) -> (i32, i32) {
    %c0_i32 = arith.constant 0 : i32
    %c0_i32_0 = arith.constant 0 : i32
    %c0_i32_1 = arith.constant 0 : i32
    return %c0_i32, %c0_i32_0 : i32, i32
  }
  func.func @transform_6(%arg0: i32) -> (i32, i32) {
    %c0_i32 = arith.constant 0 : i32
    %c0_i32_0 = arith.constant 0 : i32
    %c0_i32_1 = arith.constant 0 : i32
    return %c0_i32, %c0_i32_0 : i32, i32
  }
  func.func @transform_7(%arg0: i32) -> (i32, i32) {
    %c0_i32 = arith.constant 0 : i32
    %c0_i32_0 = arith.constant 0 : i32
    return %arg0, %c0_i32 : i32, i32
  }
}

</mosaic_0001>

<bundles_post_ra>
// kernel: tpu_custom_call.1
= control target key start
LH: loop header
LB: loop body
LE: loop exit
PB: predicated region body
PF: predicated region fallthrough
CT: control target
= control target key end

     0   :  { %12 = vsyncpa [#allocation3], 0  ;;  %s2393_s0 = inlined_call_operand.vmem [shape: bf16[512,16], index: 0, kind: input, shape index: {}]   ;;  %s2394_s1 = inlined_call_operand.vmem [shape: bf16[16,64], index: 1, kind: input, shape index: {}]   ;;  %s2395_s2 = inlined_call_operand.vmem [shape: f32[1,64], index: 2, kind: input, shape index: {}]   ;;  %s2396_s3 = inlined_call_operand.vmem [shape: bf16[64,64], index: 3, kind: input, shape index: {}]   ;;  %s2397_s4 = inlined_call_operand.vmem [shape: f32[1,64], index: 4, kind: input, shape index: {}]   ;;  %s2398_s5 = inlined_call_operand.vmem [shape: bf16[64,128], index: 5, kind: input, shape index: {}]   ;;  %s2399_s6 = inlined_call_operand.vmem [shape: f32[1,128], index: 6, kind: input, shape index: {}]   ;;  %s2400_s7 = inlined_call_operand.hbm [shape: f32[512,128], index: 7, kind: output, shape index: {}]  }
   0x1   :  { %14 = vsyncpa [#allocation3 + $0x1], 0  ;;  %s2042_s24 = smov 0   ;;  %s2044_s25 = smov 0  }
   0x2   :  { %s2046_s26 = smov 0   ;;  %s2048_s27 = smov 0  }
   0x3 LB: > { %s2063_s28 = sadd.s32 4294967295, %s1997_s27   ;;  %s1479_s29 = sadd.s32 4294967294, %s1997_s27   ;;  %s1997_s27 = sphi %s2048_s27, %s2406_s27   ;;  %s1993_s26 = sphi %s2046_s26, %s2405_s26   ;;  %s1989_s25 = sphi %s2044_s25, %s2404_s25   ;;  %s1985_s24 = sphi %s2042_s24, %s2403_s24  }
   0x4   : > { %s2067_s30 = sadd.s32 1, %s1997_s27   ;;  %s179_s8 = sadd.s32 1, %s1993_s26 }
   0x5   : > { %s176_s9 = ssub.s32 %s1997_s27, %s2067_s30  ;;  %p189_p0 = scmp.ne.s32.totalorder %s1993_s26, %s1989_s25 }
   0x6   : > { %p177_p1 = scmp.eq.s32.totalorder %s176_s9, 0  ;;  %p190_p2 = scmp.eq.s32.totalorder %s2063_s28, 1 }
   0x7   : > { %p195_p3 = scmp.ne.s32.totalorder %s1989_s25, %s1985_s24  ;;  %p196_p4 = scmp.eq.s32.totalorder %s1479_s29, 1 }
   0x8   : > { %s2078_s10 = scalar_select %p177_p1, %s1993_s26, %s179_s8  }
   0x9   : > { %p2080_p5 = por %p190_p2, %p189_p0  ;;  %p2084_p6 = por %p196_p4, %p195_p3 }
   0xa   : > { %p1482_p7 = scmp.ge.s32.totalorder %s1997_s27, 1  ;;  %p241_p8 = scmp.lt.s32.totalorder %s1997_s27, 3 }
   0xc   : > { %p242_p9 = pnand %p1482_p7, %p241_p8 }
   0xd   : > { %v1782_v0 = vld [vmem:[%s2394_s1] sm:$0xff] (!%p242_p9)   ;;  %s1484_s15 = sshll.u32 (!%p242_p9), %s2063_s28, 5  ;;  %vm408_vm0 = vcmask (!%p242_p9), 130048   ;;  %v1800_v8 = vld [vmem:[%s2396_s3 + $0x8] sm:$0xff] (!%p242_p9)   ;;  %v1801_v11 = vld [vmem:[%s2396_s3 + $0x10] sm:$0xff] (!%p242_p9)   ;;  %vm705_vm1 = vcmask (!%p242_p9), 523264  }
   0xe   : > { %245 = sbr.rel (%p242_p9) target bundleno = 789 (0x315), region = 48  ;;  %p274_p10 = scmp.lt.s32.totalorder (!%p242_p9), %s1484_s15, 63  ;;  %1625 = vmatprep.subr.bf16.mxu0 (!%p242_p9), %v1782_v0  ;;  %1739 = vmatprep.subr.bf16.mxu1 (!%p242_p9), %v1782_v0  ;;  %v1799_v1 = vld [vmem:[%s2396_s3] sm:$0xff] (!%p242_p9)   ;;  %v1802_v20 = vld [vmem:[%s2396_s3 + $0x18] sm:$0xff] (!%p242_p9)   ;;  %v1804_v22 = vld [vmem:[%s2398_s5 + $0x8] sm:$0xff] (!%p242_p9)  }
   0xf   : > { %1626 = vmatpush3.bf16.msra.mxu0 (!%p242_p9), %v1782_v0  ;;  %1740 = vmatpush3.bf16.msra.mxu1 (!%p242_p9), %v1782_v0  ;;  %v1803_v21 = vld [vmem:[%s2398_s5] sm:$0xff] (!%p242_p9)   ;;  %v1805_v23 = vld [vmem:[%s2398_s5 + $0x10] sm:$0xff] (!%p242_p9)   ;;  %s270_s14 = sand.u32 (!%p242_p9), 1, %s1989_s25   ;;  %s1567_s17 = sshll.u32 (!%p242_p9), %s2063_s28, 12 }
  0x10   : > { %1659 = vmatprep.subr.bf16.mxu1 (!%p242_p9), %v1799_v1  ;;  %1699 = vmatprep.subr.bf16.mxu0 (!%p242_p9), %v1803_v21  ;;  %v2155_v24 = vld [vmem:[%s2395_s2] ss:$0 sm:$0xff] (!%p242_p9)  ;;  %s2352_s28 = scalar_lea.sflag (!%p242_p9), [#allocation3], %s270_s14  ;;  %s1999_s23 = smov (!%p242_p9), [#allocation2]  }
  0x11   : > { %s1939_s29 = sshll.u32 (!%p242_p9), %s1999_s23, 4  ;;  %s1940_s29 = int_to_ptr.vmem [resolvable:$false] %s1939_s29 }
  0x12   : > { %s1941_s8 = scalar_lea.vmem (!%p242_p9), %s1940_s29, 8192 }
  0x15   : > { %s2408_s15 = smov (!%p274_p10, %s1484_s15), 63 }
  0x16   : > { %s1485_s18 = sshll.u32 %s2408_s15, 2  ;;  %s1483_s15 = sshll.u32 %s270_s14, 8 }
  0x17   : > { %s2100_s21 = scalar_lea.vmem %s2393_s0, %s1485_s18  ;;  %s2291_s16 = scalar_lea.vmem [#allocation2], %s1483_s15 }
  0x18   : > { %v1783_v2 = vld [vmem:[%s2100_s21] sm:$0xff]   ;;  %v1784_v3 = vld [vmem:[%s2100_s21 + $0x8] sm:$0xff]   ;;  %v1785_v4 = vld [vmem:[%s2100_s21 + $0x10] sm:$0xff]   ;;  %s1417_s18 = sshll.u32 %s2291_s16, 4  ;;  %s2345_s18 = int_to_ptr.vmem [resolvable:$true] %s1417_s18 }
  0x19   : > { %1627 = vmatprep.mubr.msk.bf16.mxu0 %vm408_vm0, %v1783_v2  ;;  %v1786_v5 = vld [vmem:[%s2100_s21 + $0x18] sm:$0xff]   ;;  %v1787_v6 = vld [vmem:[%s2100_s21 + $0x20] sm:$0xff]   ;;  %v1792_v9 = vld [vmem:[%s2100_s21 + $0x48] sm:$0xff]   ;;  %s1935_s22 = scalar_lea.vmem %s2345_s18, 4096  ;;  %p1942_p0 = scmp.lt.s32.totalorder %s2345_s18, %s1940_s29 }
  0x1a   : > { %1628 = vmatmul.mubr.msk.bf16.vlgmr.msra.gmra.mrb[0].mxu0 %vm408_vm0, %v1784_v3  ;;  %v1791_v7 = vld [vmem:[%s2100_s21 + $0x40] sm:$0xff]   ;;  %v1793_v10 = vld [vmem:[%s2100_s21 + $0x50] sm:$0xff]   ;;  %v1788_v12 = vld [vmem:[%s2100_s21 + $0x28] sm:$0xff]   ;;  %p1936_p11 = scmp.ne.s32.totalorder %s2345_s18, %s1935_s22  ;;  %p1943_p1 = scmp.lt.s32.totalorder %s1941_s8, %s1935_s22 }
  0x1b   : > { %1631 = vmatprep.mubr.msk.bf16.mxu0 %vm408_vm0, %v1785_v4  ;;  %1643 = vmatprep.mubr.msk.bf16.mxu1 %vm408_vm0, %v1791_v7  ;;  %v1789_v13 = vld [vmem:[%s2100_s21 + $0x30] sm:$0xff]   ;;  %v1794_v14 = vld [vmem:[%s2100_s21 + $0x58] sm:$0xff]   ;;  %v1795_v15 = vld [vmem:[%s2100_s21 + $0x60] sm:$0xff]  }
  0x1c   : > { %1644 = vmatmul.mubr.msk.bf16.vlgmr.msra.gmra.mrb[0].mxu1 %vm408_vm0, %v1792_v9  ;;  %v1790_v16 = vld [vmem:[%s2100_s21 + $0x38] sm:$0xff]   ;;  %v1796_v17 = vld [vmem:[%s2100_s21 + $0x68] sm:$0xff]   ;;  %v1797_v18 = vld [vmem:[%s2100_s21 + $0x70] sm:$0xff]   ;;  %1700 = vmatpush3.bf16.msra.mxu0 %v1803_v21  ;;  %p1937_p12 = pnand %p1936_p11, %p2080_p5  ;;  %p1944_p2 = por %p1943_p1, %p1942_p0 }
  0x1d   : > { %1647 = vmatprep.mubr.msk.bf16.mxu1 %vm408_vm0, %v1793_v10  ;;  %1660 = vmatpush3.bf16.msra.mxu1 %v1799_v1  ;;  %v1798_v19 = vld [vmem:[%s2100_s21 + $0x78] sm:$0xff]   ;;  %s2343_s21 = scalar_lea.hbm %s2400_s7, %s1567_s17 }
  0x1e   : > { %1661 = vmatprep.subr.bf16.mxu1 %v1800_v8  ;;  %1701 = vmatprep.subr.bf16.mxu0 %v1804_v22  ;;  %p1938_p13 = pneg %p1937_p12 }
  0x20   : > { %1702 = vmatpush3.bf16.msra.mxu0 %v1804_v22  ;;  %p1945_p3 = pnand %p1944_p2, %p1938_p13 }
  0x21   : > { %1662 = vmatpush3.bf16.msra.mxu1 %v1800_v8  ;;  %1703 = vmatprep.subr.bf16.mxu0 %v1805_v23 }
  0x22   : > { %1632 = vmatmul.mubr.msk.bf16.gmra.mrb[4].mxu0 %vm408_vm0, %v1786_v5  ;;  %1663 = vmatprep.subr.bf16.mxu1 %v1801_v11 }
  0x23   : > { %1635 = vmatprep.mubr.msk.bf16.mxu0 %vm408_vm0, %v1787_v6 }
  0x24   : > { %1648 = vmatmul.mubr.msk.bf16.gmra.mrb[4].mxu1 %vm408_vm0, %v1794_v14  ;;  %1704 = vmatpush3.bf16.msra.mxu0 %v1805_v23 }
  0x25   : > { %1651 = vmatprep.mubr.msk.bf16.mxu1 %vm408_vm0, %v1795_v15  ;;  %1664 = vmatpush3.bf16.msra.mxu1 %v1801_v11 }
  0x26   : > { %1665 = vmatprep.subr.bf16.mxu1 %v1802_v20 }
  0x29   : > { %1666 = vmatpush3.bf16.msra.mxu1 %v1802_v20 }
  0x2a   : > { %1636 = vmatmul.mubr.msk.bf16.gmra.mrb[8].mxu0 %vm408_vm0, %v1788_v12 }
  0x2b   : > { %1639 = vmatprep.mubr.msk.bf16.mxu0 %vm408_vm0, %v1789_v13 }
  0x2c   : > { %1652 = vmatmul.mubr.msk.bf16.gmra.mrb[8].mxu1 %vm408_vm0, %v1796_v17 }
  0x2d   : > { %1655 = vmatprep.mubr.msk.bf16.mxu1 %vm408_vm0, %v1797_v18 }
  0x32   : > { %1640 = vmatmul.mubr.msk.bf16.gmra.mrb[12].mxu0 %vm408_vm0, %v1790_v16 }
  0x34   : > { %1656 = vmatmul.mubr.msk.bf16.gmra.mrb[12].mxu1 %vm408_vm0, %v1798_v19 }
  0xed   : > { %v1629_v25 = vpop.f32.mrb[0].mxu0 }
  0xee   : > { %v500_v26 = vadd.f32 %v1629_v25, %v2155_v24  ;;  %v491_v27 = vpop.f32.mrb[1].mxu0 }
  0xef   : > { %v492_v28 = vadd.f32 %v2155_v24, %v491_v27  ;;  %v1630_v29 = vpop.f32.mrb[2].mxu0  ;;  %v1645_v40 = vpop.f32.mrb[0].mxu1 }
  0xf0   : > { %v503_v30 = vadd.f32 %v1630_v29, %v2155_v24  ;;  %v494_v31 = vpop.f32.mrb[3].mxu0  ;;  %v620_v33 = vmax.f32 %v500_v26, 0.0  ;;  %v564_v43 = vadd.f32 %v1645_v40, %v2155_v24  ;;  %v555_v44 = vpop.f32.mrb[1].mxu1 }
  0xf1   : > { %v495_v32 = vadd.f32 %v2155_v24, %v494_v31  ;;  %v618_v35 = vmax.f32 %v492_v28, 0.0  ;;  %v556_v47 = vadd.f32 %v2155_v24, %v555_v44  ;;  %v1646_v48 = vpop.f32.mrb[2].mxu1 }
  0xf2   : > { %v621_v34 = vmax.f32 %v503_v30, 0.0  ;;  %v636_v51 = vmax.f32 %v564_v43, 0.0  ;;  %v567_v52 = vadd.f32 %v1646_v48, %v2155_v24  ;;  %v558_v53 = vpop.f32.mrb[3].mxu1 }
  0xf3   : > { %v619_v36 = vmax.f32 %v495_v32, 0.0  ;;  %v634_v55 = vmax.f32 %v556_v47, 0.0  ;;  %v559_v56 = vadd.f32 %v2155_v24, %v558_v53 }
  0xf4   : > { %v651_v37 = vpack.c.bf16 %v621_v34, %v620_v33  ;;  %v637_v59 = vmax.f32 %v567_v52, 0.0 }
  0xf5   : > { %v650_v38 = vpack.c.bf16 %v619_v36, %v618_v35  ;;  %v1633_v39 = vpop.f32.mrb[4].mxu0  ;;  %v635_v62 = vmax.f32 %v559_v56, 0.0 }
  0xf6   : > { %v516_v41 = vadd.f32 %v1633_v39, %v2155_v24  ;;  %v507_v42 = vpop.f32.mrb[5].mxu0  ;;  %v2171_v0 = vpack.c.bf16 %v637_v59, %v636_v51 }
  0xf7   : > { %v508_v45 = vadd.f32 %v2155_v24, %v507_v42  ;;  %v1634_v46 = vpop.f32.mrb[6].mxu0  ;;  %1667 = vmatprep.mubr.msk.bf16.mxu1 %vm705_vm1, %v650_v38  ;;  %v2173_v3 = vpack.c.bf16 %v635_v62, %v634_v55  ;;  %v1649_v4 = vpop.f32.mrb[4].mxu1 }
  0xf8   : > { %v519_v49 = vadd.f32 %v1634_v46, %v2155_v24  ;;  %v510_v50 = vpop.f32.mrb[7].mxu0  ;;  %1668 = vmatmul.mubr.msk.bf16.vlgmr.msra.gmra.mrb[16].mxu1 %vm705_vm1, %v651_v37  ;;  %v624_v57 = vmax.f32 %v516_v41, 0.0  ;;  %v580_v7 = vadd.f32 %v1649_v4, %v2155_v24  ;;  %v571_v8 = vpop.f32.mrb[5].mxu1 }
  0xf9   : > { %v511_v54 = vadd.f32 %v2155_v24, %v510_v50  ;;  %v622_v60 = vmax.f32 %v508_v45, 0.0  ;;  %v572_v11 = vadd.f32 %v2155_v24, %v571_v8  ;;  %v1650_v12 = vpop.f32.mrb[6].mxu1 }
  0xfa   : > { %v625_v58 = vmax.f32 %v519_v49, 0.0  ;;  %v640_v15 = vmax.f32 %v580_v7, 0.0  ;;  %v583_v16 = vadd.f32 %v1650_v12, %v2155_v24  ;;  %v574_v17 = vpop.f32.mrb[7].mxu1 }
  0xfb   : > { %v623_v61 = vmax.f32 %v511_v54, 0.0  ;;  %v638_v19 = vmax.f32 %v572_v11, 0.0  ;;  %v575_v20 = vadd.f32 %v2155_v24, %v574_v17 }
  0xfc   : > { %v653_v63 = vpack.c.bf16 %v625_v58, %v624_v57  ;;  %v641_v23 = vmax.f32 %v583_v16, 0.0 }
  0xfd   : > { %v652_v1 = vpack.c.bf16 %v623_v61, %v622_v60  ;;  %v1637_v2 = vpop.f32.mrb[8].mxu0  ;;  %v639_v27 = vmax.f32 %v575_v20, 0.0 }
  0xfe   : > { %v532_v5 = vadd.f32 %v1637_v2, %v2155_v24  ;;  %v523_v6 = vpop.f32.mrb[9].mxu0  ;;  %v661_v29 = vpack.c.bf16 %v641_v23, %v640_v15 }
  0xff   : > { %v524_v9 = vadd.f32 %v2155_v24, %v523_v6  ;;  %v1638_v10 = vpop.f32.mrb[10].mxu0  ;;  %1671 = vmatprep.mubr.msk.bf16.mxu1 %vm705_vm1, %v652_v1  ;;  %v660_v32 = vpack.c.bf16 %v639_v27, %v638_v19  ;;  %v1653_v33 = vpop.f32.mrb[8].mxu1 }
 0x100   : > { %v535_v13 = vadd.f32 %v1638_v10, %v2155_v24  ;;  %v526_v14 = vpop.f32.mrb[11].mxu0  ;;  %1672 = vmatmul.mubr.msk.bf16.gmra.mrb[20].mxu1 %vm705_vm1, %v653_v63  ;;  %v628_v21 = vmax.f32 %v532_v5, 0.0  ;;  %v596_v36 = vadd.f32 %v1653_v33, %v2155_v24  ;;  %v587_v37 = vpop.f32.mrb[9].mxu1 }
 0x101   : > { %v527_v18 = vadd.f32 %v2155_v24, %v526_v14  ;;  %v626_v25 = vmax.f32 %v524_v9, 0.0  ;;  %v588_v40 = vadd.f32 %v2155_v24, %v587_v37  ;;  %v1654_v41 = vpop.f32.mrb[10].mxu1 }
 0x102   : > { %v629_v22 = vmax.f32 %v535_v13, 0.0  ;;  %v644_v44 = vmax.f32 %v596_v36, 0.0  ;;  %v599_v45 = vadd.f32 %v1654_v41, %v2155_v24  ;;  %v590_v46 = vpop.f32.mrb[11].mxu1 }
 0x103   : > { %v627_v26 = vmax.f32 %v527_v18, 0.0  ;;  %v642_v48 = vmax.f32 %v588_v40, 0.0  ;;  %v591_v49 = vadd.f32 %v2155_v24, %v590_v46 }
 0x104   : > { %v655_v28 = vpack.c.bf16 %v629_v22, %v628_v21  ;;  %v645_v52 = vmax.f32 %v599_v45, 0.0 }
 0x105   : > { %v654_v30 = vpack.c.bf16 %v627_v26, %v626_v25  ;;  %v1641_v31 = vpop.f32.mrb[12].mxu0  ;;  %v643_v55 = vmax.f32 %v591_v49, 0.0 }
 0x106   : > { %v548_v34 = vadd.f32 %v1641_v31, %v2155_v24  ;;  %v539_v35 = vpop.f32.mrb[13].mxu0  ;;  %v663_v57 = vpack.c.bf16 %v645_v52, %v644_v44 }
 0x107   : > { %v540_v38 = vadd.f32 %v2155_v24, %v539_v35  ;;  %v1642_v39 = vpop.f32.mrb[14].mxu0  ;;  %1675 = vmatprep.mubr.msk.bf16.mxu1 %vm705_vm1, %v654_v30  ;;  %v662_v59 = vpack.c.bf16 %v643_v55, %v642_v48  ;;  %v1657_v60 = vpop.f32.mrb[12].mxu1 }
 0x108   : > { %v551_v42 = vadd.f32 %v1642_v39, %v2155_v24  ;;  %v542_v43 = vpop.f32.mrb[15].mxu0  ;;  %1676 = vmatmul.mubr.msk.bf16.gmra.mrb[24].mxu1 %vm705_vm1, %v655_v28  ;;  %v632_v50 = vmax.f32 %v548_v34, 0.0  ;;  %v612_v61 = vadd.f32 %v1657_v60, %v2155_v24  ;;  %v603_v62 = vpop.f32.mrb[13].mxu1 }
 0x109   : > { %v543_v47 = vadd.f32 %v2155_v24, %v542_v43  ;;  %v630_v53 = vmax.f32 %v540_v38, 0.0  ;;  %v604_v63 = vadd.f32 %v2155_v24, %v603_v62  ;;  %v1658_v1 = vpop.f32.mrb[14].mxu1 }
 0x10a   : > { %v633_v51 = vmax.f32 %v551_v42, 0.0  ;;  %v648_v2 = vmax.f32 %v612_v61, 0.0  ;;  %v615_v4 = vadd.f32 %v1658_v1, %v2155_v24  ;;  %v606_v5 = vpop.f32.mrb[15].mxu1 }
 0x10b   : > { %v631_v54 = vmax.f32 %v543_v47, 0.0  ;;  %v646_v6 = vmax.f32 %v604_v63, 0.0  ;;  %v607_v7 = vadd.f32 %v2155_v24, %v606_v5  ;;  %v1806_v24 = vld [vmem:[%s2398_s5 + $0x18] sm:$0xff]  }
 0x10c   : > { %v657_v56 = vpack.c.bf16 %v633_v51, %v632_v50  ;;  %v649_v8 = vmax.f32 %v615_v4, 0.0  ;;  %1705 = vmatprep.subr.bf16.mxu0 %v1806_v24 }
 0x10d   : > { %v656_v58 = vpack.c.bf16 %v631_v54, %v630_v53  ;;  %v647_v9 = vmax.f32 %v607_v7, 0.0  ;;  %1706 = vmatpush3.bf16.msra.mxu0 %v1806_v24 }
 0x10e   : > { %v665_v10 = vpack.c.bf16 %v649_v8, %v648_v2 }
 0x10f   : > { %1679 = vmatprep.mubr.msk.bf16.mxu1 %vm705_vm1, %v656_v58  ;;  %v664_v11 = vpack.c.bf16 %v647_v9, %v646_v6 }
 0x110   : > { %1680 = vmatmul.mubr.msk.bf16.gmra.mrb[28].mxu1 %vm705_vm1, %v657_v56 }
 0x111   : > { %1683 = vmatprep.mubr.msk.bf16.mxu1 %vm705_vm1, %v2173_v3 }
 0x118   : > { %1684 = vmatmul.mubr.msk.bf16.gmra.mrb[32].mxu1 %vm705_vm1, %v2171_v0  ;;  %v2217_v0 = vld [vmem:[%s2397_s4] ss:$0 sm:$0xff] }
 0x119   : > { %1687 = vmatprep.mubr.msk.bf16.mxu1 %vm705_vm1, %v660_v32 }
 0x120   : > { %1688 = vmatmul.mubr.msk.bf16.gmra.mrb[36].mxu1 %vm705_vm1, %v661_v29 }
 0x121   : > { %1691 = vmatprep.mubr.msk.bf16.mxu1 %vm705_vm1, %v662_v59 }
 0x128   : > { %1692 = vmatmul.mubr.msk.bf16.gmra.mrb[40].mxu1 %vm705_vm1, %v663_v57 }
 0x129   : > { %1695 = vmatprep.mubr.msk.bf16.mxu1 %vm705_vm1, %v664_v11 }
 0x130   : > { %1696 = vmatmul.mubr.msk.bf16.gmra.mrb[44].mxu1 %vm705_vm1, %v665_v10 }
 0x1cb   : > { %v1669_v3 = vpop.f32.mrb[16].mxu1 }
 0x1cc   : > { %v797_v12 = vadd.f32 %v1669_v3, %v2217_v0  ;;  %v788_v13 = vpop.f32.mrb[17].mxu1 }
 0x1cd   : > { %v789_v14 = vadd.f32 %v2217_v0, %v788_v13  ;;  %v1670_v15 = vpop.f32.mrb[18].mxu1 }
 0x1ce   : > { %v800_v16 = vadd.f32 %v1670_v15, %v2217_v0  ;;  %v791_v17 = vpop.f32.mrb[19].mxu1  ;;  %v917_v19 = vmax.f32 %v797_v12, 0.0 }
 0x1cf   : > { %v792_v18 = vadd.f32 %v2217_v0, %v791_v17  ;;  %v915_v21 = vmax.f32 %v789_v14, 0.0 }
 0x1d0   : > { %v918_v20 = vmax.f32 %v800_v16, 0.0 }
 0x1d1   : > { %v916_v22 = vmax.f32 %v792_v18, 0.0 }
 0x1d2   : > { %v948_v23 = vpack.c.bf16 %v918_v20, %v917_v19 }
 0x1d3   : > { %v947_v25 = vpack.c.bf16 %v916_v22, %v915_v21  ;;  %v1673_v26 = vpop.f32.mrb[20].mxu1 }
 0x1d4   : > { %v813_v27 = vadd.f32 %v1673_v26, %v2217_v0  ;;  %v804_v28 = vpop.f32.mrb[21].mxu1 }
 0x1d5   : > { %v805_v29 = vadd.f32 %v2217_v0, %v804_v28  ;;  %v1674_v30 = vpop.f32.mrb[22].mxu1  ;;  %1707 = vmatprep.mubr.msk.bf16.mxu0 %vm705_vm1, %v947_v25 }
 0x1d6   : > { %v816_v31 = vadd.f32 %v1674_v30, %v2217_v0  ;;  %v807_v32 = vpop.f32.mrb[23].mxu1  ;;  %1708 = vmatmul.mubr.msk.bf16.vlgmr.msra.gmra.mrb[16].mxu0 %vm705_vm1, %v948_v23  ;;  %v921_v34 = vmax.f32 %v813_v27, 0.0 }
 0x1d7   : > { %v808_v33 = vadd.f32 %v2217_v0, %v807_v32  ;;  %v919_v36 = vmax.f32 %v805_v29, 0.0 }
 0x1d8   : > { %v922_v35 = vmax.f32 %v816_v31, 0.0 }
 0x1d9   : > { %v920_v37 = vmax.f32 %v808_v33, 0.0 }
 0x1da   : > { %v950_v38 = vpack.c.bf16 %v922_v35, %v921_v34 }
 0x1db   : > { %v949_v39 = vpack.c.bf16 %v920_v37, %v919_v36  ;;  %v1677_v40 = vpop.f32.mrb[24].mxu1 }
 0x1dc   : > { %v829_v41 = vadd.f32 %v1677_v40, %v2217_v0  ;;  %v820_v42 = vpop.f32.mrb[25].mxu1 }
 0x1dd   : > { %v821_v43 = vadd.f32 %v2217_v0, %v820_v42  ;;  %v1678_v44 = vpop.f32.mrb[26].mxu1  ;;  %1711 = vmatprep.mubr.msk.bf16.mxu0 %vm705_vm1, %v949_v39 }
 0x1de   : > { %v832_v45 = vadd.f32 %v1678_v44, %v2217_v0  ;;  %v823_v46 = vpop.f32.mrb[27].mxu1  ;;  %1712 = vmatmul.mubr.msk.bf16.gmra.mrb[20].mxu0 %vm705_vm1, %v950_v38  ;;  %v925_v48 = vmax.f32 %v829_v41, 0.0 }
 0x1df   : > { %v824_v47 = vadd.f32 %v2217_v0, %v823_v46  ;;  %v923_v50 = vmax.f32 %v821_v43, 0.0 }
 0x1e0   : > { %v926_v49 = vmax.f32 %v832_v45, 0.0 }
 0x1e1   : > { %v924_v51 = vmax.f32 %v824_v47, 0.0 }
 0x1e2   : > { %v952_v52 = vpack.c.bf16 %v926_v49, %v925_v48 }
 0x1e3   : > { %v951_v53 = vpack.c.bf16 %v924_v51, %v923_v50  ;;  %v1681_v54 = vpop.f32.mrb[28].mxu1 }
 0x1e4   : > { %v845_v55 = vadd.f32 %v1681_v54, %v2217_v0  ;;  %v836_v56 = vpop.f32.mrb[29].mxu1 }
 0x1e5   : > { %v837_v57 = vadd.f32 %v2217_v0, %v836_v56  ;;  %v1682_v58 = vpop.f32.mrb[30].mxu1  ;;  %1715 = vmatprep.mubr.msk.bf16.mxu0 %vm705_vm1, %v951_v53 }
 0x1e6   : > { %v848_v59 = vadd.f32 %v1682_v58, %v2217_v0  ;;  %v839_v60 = vpop.f32.mrb[31].mxu1  ;;  %1716 = vmatmul.mubr.msk.bf16.gmra.mrb[24].mxu0 %vm705_vm1, %v952_v52  ;;  %v929_v62 = vmax.f32 %v845_v55, 0.0 }
 0x1e7   : > { %v840_v61 = vadd.f32 %v2217_v0, %v839_v60  ;;  %v927_v1 = vmax.f32 %v837_v57, 0.0 }
 0x1e8   : > { %v930_v63 = vmax.f32 %v848_v59, 0.0 }
 0x1e9   : > { %v928_v2 = vmax.f32 %v840_v61, 0.0  ;;  %v2270_v61 = vld [vmem:[%s2399_s6] ss:$0 sm:$0xff] }
 0x1ea   : > { %v954_v4 = vpack.c.bf16 %v930_v63, %v929_v62 }
 0x1eb   : > { %v953_v5 = vpack.c.bf16 %v928_v2, %v927_v1  ;;  %v1685_v6 = vpop.f32.mrb[32].mxu1 }
 0x1ec   : > { %v861_v7 = vadd.f32 %v1685_v6, %v2217_v0  ;;  %v852_v8 = vpop.f32.mrb[33].mxu1 }
 0x1ed   : > { %v853_v9 = vadd.f32 %v2217_v0, %v852_v8  ;;  %v1686_v10 = vpop.f32.mrb[34].mxu1  ;;  %1719 = vmatprep.mubr.msk.bf16.mxu0 %vm705_vm1, %v953_v5 }
 0x1ee   : > { %v864_v11 = vadd.f32 %v1686_v10, %v2217_v0  ;;  %v855_v24 = vpop.f32.mrb[35].mxu1  ;;  %1720 = vmatmul.mubr.msk.bf16.gmra.mrb[28].mxu0 %vm705_vm1, %v954_v4  ;;  %v933_v12 = vmax.f32 %v861_v7, 0.0 }
 0x1ef   : > { %v856_v3 = vadd.f32 %v2217_v0, %v855_v24  ;;  %v931_v14 = vmax.f32 %v853_v9, 0.0 }
 0x1f0   : > { %v934_v13 = vmax.f32 %v864_v11, 0.0 }
 0x1f1   : > { %v932_v15 = vmax.f32 %v856_v3, 0.0 }
 0x1f2   : > { %v956_v16 = vpack.c.bf16 %v934_v13, %v933_v12 }
 0x1f3   : > { %v955_v17 = vpack.c.bf16 %v932_v15, %v931_v14  ;;  %v1689_v18 = vpop.f32.mrb[36].mxu1 }
 0x1f4   : > { %v877_v19 = vadd.f32 %v1689_v18, %v2217_v0  ;;  %v868_v20 = vpop.f32.mrb[37].mxu1 }
 0x1f5   : > { %v869_v21 = vadd.f32 %v2217_v0, %v868_v20  ;;  %v1690_v22 = vpop.f32.mrb[38].mxu1  ;;  %1723 = vmatprep.mubr.msk.bf16.mxu0 %vm705_vm1, %v955_v17 }
 0x1f6   : > { %v880_v23 = vadd.f32 %v1690_v22, %v2217_v0  ;;  %v871_v25 = vpop.f32.mrb[39].mxu1  ;;  %1724 = vmatmul.mubr.msk.bf16.gmra.mrb[32].mxu0 %vm705_vm1, %v956_v16  ;;  %v937_v27 = vmax.f32 %v877_v19, 0.0 }
 0x1f7   : > { %v872_v26 = vadd.f32 %v2217_v0, %v871_v25  ;;  %v935_v29 = vmax.f32 %v869_v21, 0.0 }
 0x1f8   : > { %v938_v28 = vmax.f32 %v880_v23, 0.0 }
 0x1f9   : > { %v936_v30 = vmax.f32 %v872_v26, 0.0 }
 0x1fa   : > { %v958_v31 = vpack.c.bf16 %v938_v28, %v937_v27 }
 0x1fb   : > { %v957_v32 = vpack.c.bf16 %v936_v30, %v935_v29  ;;  %v1693_v33 = vpop.f32.mrb[40].mxu1 }
 0x1fc   : > { %v893_v34 = vadd.f32 %v1693_v33, %v2217_v0  ;;  %v884_v35 = vpop.f32.mrb[41].mxu1 }
 0x1fd   : > { %v885_v36 = vadd.f32 %v2217_v0, %v884_v35  ;;  %v1694_v37 = vpop.f32.mrb[42].mxu1  ;;  %1727 = vmatprep.mubr.msk.bf16.mxu0 %vm705_vm1, %v957_v32 }
 0x1fe   : > { %v896_v38 = vadd.f32 %v1694_v37, %v2217_v0  ;;  %v887_v39 = vpop.f32.mrb[43].mxu1  ;;  %1728 = vmatmul.mubr.msk.bf16.gmra.mrb[36].mxu0 %vm705_vm1, %v958_v31  ;;  %v941_v41 = vmax.f32 %v893_v34, 0.0 }
 0x1ff   : > { %v888_v40 = vadd.f32 %v2217_v0, %v887_v39  ;;  %v939_v43 = vmax.f32 %v885_v36, 0.0 }
 0x200   : > { %v942_v42 = vmax.f32 %v896_v38, 0.0 }
 0x201   : > { %v940_v44 = vmax.f32 %v888_v40, 0.0 }
 0x202   : > { %v960_v45 = vpack.c.bf16 %v942_v42, %v941_v41 }
 0x203   : > { %v959_v46 = vpack.c.bf16 %v940_v44, %v939_v43  ;;  %v1697_v47 = vpop.f32.mrb[44].mxu1 }
 0x204   : > { %v909_v48 = vadd.f32 %v1697_v47, %v2217_v0  ;;  %v900_v49 = vpop.f32.mrb[45].mxu1 }
 0x205   : > { %v901_v50 = vadd.f32 %v2217_v0, %v900_v49  ;;  %v1698_v51 = vpop.f32.mrb[46].mxu1  ;;  %1731 = vmatprep.mubr.msk.bf16.mxu0 %vm705_vm1, %v959_v46 }
 0x206   : > { %v912_v52 = vadd.f32 %v1698_v51, %v2217_v0  ;;  %v903_v53 = vpop.f32.mrb[47].mxu1  ;;  %1732 = vmatmul.mubr.msk.bf16.gmra.mrb[40].mxu0 %vm705_vm1, %v960_v45  ;;  %v945_v55 = vmax.f32 %v909_v48, 0.0 }
 0x207   : > { %v904_v54 = vadd.f32 %v2217_v0, %v903_v53  ;;  %v943_v57 = vmax.f32 %v901_v50, 0.0 }
 0x208   : > { %v946_v56 = vmax.f32 %v912_v52, 0.0 }
 0x209   : > { %v944_v58 = vmax.f32 %v904_v54, 0.0 }
 0x20a   : > { %v962_v59 = vpack.c.bf16 %v946_v56, %v945_v55 }
 0x20b   : > { %v961_v60 = vpack.c.bf16 %v944_v58, %v943_v57 }
 0x20d   : > { %1735 = vmatprep.mubr.msk.bf16.mxu0 %vm705_vm1, %v961_v60 }
 0x20e   : > { %1736 = vmatmul.mubr.msk.bf16.gmra.mrb[44].mxu0 %vm705_vm1, %v962_v59 }
 0x2a9   : > { %v1709_v62 = vpop.f32.mrb[16].mxu0 }
 0x2aa   : > { %v1093_v63 = vadd.f32 %v1709_v62, %v2270_v61  ;;  %v1084_v1 = vpop.f32.mrb[17].mxu0 }
 0x2ab   : > { %v1085_v0 = vadd.f32 %v2270_v61, %v1084_v1  ;;  %v1710_v2 = vpop.f32.mrb[18].mxu0 }
 0x2ac   : > { %v1213_v4 = vsub.f32 0.0, %v1093_v63  ;;  %v1096_v5 = vadd.f32 %v1710_v2, %v2270_v61  ;;  %v1087_v6 = vpop.f32.mrb[19].mxu0 }
 0x2ad   : > { %v1211_v7 = vsub.f32 0.0, %v1085_v0  ;;  %v1088_v8 = vadd.f32 %v2270_v61, %v1087_v6 }
 0x2ae   : > { %v1247_v9 = vmul.f32 1.442695, %v1213_v4  ;;  %v1214_v10 = vsub.f32 0.0, %v1096_v5 }
 0x2af   : > { %v1243_v11 = vmul.f32 1.442695, %v1211_v7  ;;  %v1212_v24 = vsub.f32 0.0, %v1088_v8 }
 0x2b0   : > { %1807 = vpow2.f32 %v1247_v9  ;;  %v1249_v3 = vmul.f32 1.442695, %v1214_v10 }
 0x2b1   : > { %1809 = vpow2.f32 %v1243_v11  ;;  %v1245_v12 = vmul.f32 1.442695, %v1212_v24  ;;  %v1713_v13 = vpop.f32.mrb[20].mxu0 }
 0x2b2   : > { %1811 = vpow2.f32 %v1249_v3  ;;  %v1109_v14 = vadd.f32 %v1713_v13, %v2270_v61  ;;  %v1100_v15 = vpop.f32.mrb[21].mxu0 }
 0x2b3   : > { %1813 = vpow2.f32 %v1245_v12  ;;  %v1101_v16 = vadd.f32 %v2270_v61, %v1100_v15  ;;  %v1714_v17 = vpop.f32.mrb[22].mxu0 }
 0x2b4   : > { %v1217_v18 = vsub.f32 0.0, %v1109_v14  ;;  %v1112_v19 = vadd.f32 %v1714_v17, %v2270_v61  ;;  %v1103_v20 = vpop.f32.mrb[23].mxu0 }
 0x2b5   : > { %v1215_v21 = vsub.f32 0.0, %v1101_v16  ;;  %v1104_v22 = vadd.f32 %v2270_v61, %v1103_v20 }
 0x2b6   : > { %v1255_v23 = vmul.f32 1.442695, %v1217_v18  ;;  %v1218_v25 = vsub.f32 0.0, %v1112_v19 }
 0x2b7   : > { %v1251_v26 = vmul.f32 1.442695, %v1215_v21  ;;  %v1216_v27 = vsub.f32 0.0, %v1104_v22 }
 0x2b8   : > { %1815 = vpow2.f32 %v1255_v23  ;;  %v1257_v28 = vmul.f32 1.442695, %v1218_v25 }
 0x2b9   : > { %1817 = vpow2.f32 %v1251_v26  ;;  %v1253_v29 = vmul.f32 1.442695, %v1216_v27  ;;  %v1717_v30 = vpop.f32.mrb[24].mxu0 }
 0x2ba   : > { %v1808_v31 = vpop.eup %1807  ;;  %1819 = vpow2.f32 %v1257_v28  ;;  %v1125_v32 = vadd.f32 %v1717_v30, %v2270_v61  ;;  %v1116_v33 = vpop.f32.mrb[25].mxu0 }
 0x2bb   : > { %v1810_v34 = vpop.eup %1809  ;;  %v1309_v35 = vadd.f32 1.0, %v1808_v31  ;;  %1821 = vpow2.f32 %v1253_v29  ;;  %v1117_v36 = vadd.f32 %v2270_v61, %v1116_v33  ;;  %v1718_v37 = vpop.f32.mrb[26].mxu0 }
 0x2bc   : > { %v1812_v38 = vpop.eup %1811  ;;  %v1307_v39 = vadd.f32 1.0, %v1810_v34  ;;  %v1221_v40 = vsub.f32 0.0, %v1125_v32  ;;  %v1128_v41 = vadd.f32 %v1718_v37, %v2270_v61  ;;  %v1119_v42 = vpop.f32.mrb[27].mxu0 }
 0x2bd   : > { %v1814_v43 = vpop.eup %1813  ;;  %1823 = vrcp.f32 %v1309_v35  ;;  %v1310_v44 = vadd.f32 1.0, %v1812_v38  ;;  %v1219_v45 = vsub.f32 0.0, %v1117_v36  ;;  %v1120_v46 = vadd.f32 %v2270_v61, %v1119_v42 }
 0x2be   : > { %1825 = vrcp.f32 %v1307_v39  ;;  %v1308_v47 = vadd.f32 1.0, %v1814_v43  ;;  %v1263_v48 = vmul.f32 1.442695, %v1221_v40  ;;  %v1222_v49 = vsub.f32 0.0, %v1128_v41 }
 0x2bf   : > { %1827 = vrcp.f32 %v1310_v44  ;;  %v1259_v50 = vmul.f32 1.442695, %v1219_v45  ;;  %v1220_v51 = vsub.f32 0.0, %v1120_v46 }
 0x2c0   : > { %1829 = vrcp.f32 %v1308_v47  ;;  %v1265_v52 = vmul.f32 1.442695, %v1222_v49 }
 0x2c1   : > { %1831 = vpow2.f32 %v1263_v48  ;;  %v1261_v53 = vmul.f32 1.442695, %v1220_v51  ;;  %v1721_v54 = vpop.f32.mrb[28].mxu0 }
 0x2c2   : > { %v1816_v55 = vpop.eup %1815  ;;  %1833 = vpow2.f32 %v1259_v50  ;;  %v1141_v56 = vadd.f32 %v1721_v54, %v2270_v61  ;;  %v1132_v57 = vpop.f32.mrb[29].mxu0 }
 0x2c3   : > { %v1818_v58 = vpop.eup %1817  ;;  %v1313_v59 = vadd.f32 1.0, %v1816_v55  ;;  %1835 = vpow2.f32 %v1265_v52  ;;  %v1133_v60 = vadd.f32 %v2270_v61, %v1132_v57  ;;  %v1722_v62 = vpop.f32.mrb[30].mxu0 }
 0x2c4   : > { %v1820_v63 = vpop.eup %1819  ;;  %v1311_v1 = vadd.f32 1.0, %v1818_v58  ;;  %1837 = vpow2.f32 %v1261_v53  ;;  %v1225_v0 = vsub.f32 0.0, %v1141_v56  ;;  %v1144_v2 = vadd.f32 %v1722_v62, %v2270_v61  ;;  %v1135_v4 = vpop.f32.mrb[31].mxu0 }
 0x2c5   : > { %v1822_v5 = vpop.eup %1821  ;;  %1839 = vrcp.f32 %v1313_v59  ;;  %v1314_v6 = vadd.f32 1.0, %v1820_v63  ;;  %v1223_v7 = vsub.f32 0.0, %v1133_v60  ;;  %v1136_v8 = vadd.f32 %v2270_v61, %v1135_v4 }
 0x2c6   : > { %1841 = vrcp.f32 %v1311_v1  ;;  %v1312_v9 = vadd.f32 1.0, %v1822_v5  ;;  %v1271_v10 = vmul.f32 1.442695, %v1225_v0  ;;  %v1226_v11 = vsub.f32 0.0, %v1144_v2 }
 0x2c7   : > { %v1824_v24 = vpop.eup %1823  ;;  %1843 = vrcp.f32 %v1314_v6  ;;  %v1267_v3 = vmul.f32 1.442695, %v1223_v7  ;;  %v1224_v12 = vsub.f32 0.0, %v1136_v8 }
 0x2c8   : > { %v1826_v13 = vpop.eup %1825  ;;  %1373 = vst [vmem:[%s2291_s16 + $0x10] sm:$0xff] %v1824_v24  ;;  %1845 = vrcp.f32 %v1312_v9  ;;  %v1273_v14 = vmul.f32 1.442695, %v1226_v11 }
 0x2c9   : > { %v1828_v15 = vpop.eup %1827  ;;  %1371 = vst [vmem:[%s2291_s16] sm:$0xff] %v1826_v13  ;;  %1847 = vpow2.f32 %v1271_v10  ;;  %v1269_v16 = vmul.f32 1.442695, %v1224_v12  ;;  %v1725_v17 = vpop.f32.mrb[32].mxu0 }
 0x2ca   : > { %v1830_v18 = vpop.eup %1829  ;;  %1374 = vst [vmem:[%s2291_s16 + $0x18] sm:$0xff] %v1828_v15  ;;  %1849 = vpow2.f32 %v1267_v3  ;;  %v1157_v19 = vadd.f32 %v1725_v17, %v2270_v61  ;;  %v1148_v20 = vpop.f32.mrb[33].mxu0 }
 0x2cb   : > { %v1832_v21 = vpop.eup %1831  ;;  %1372 = vst [vmem:[%s2291_s16 + $0x8] sm:$0xff] %v1830_v18  ;;  %1851 = vpow2.f32 %v1273_v14  ;;  %v1149_v22 = vadd.f32 %v2270_v61, %v1148_v20  ;;  %v1726_v23 = vpop.f32.mrb[34].mxu0 }
 0x2cc   : > { %v1834_v25 = vpop.eup %1833  ;;  %v1317_v26 = vadd.f32 1.0, %v1832_v21  ;;  %1853 = vpow2.f32 %v1269_v16  ;;  %v1229_v27 = vsub.f32 0.0, %v1157_v19  ;;  %v1160_v28 = vadd.f32 %v1726_v23, %v2270_v61  ;;  %v1151_v29 = vpop.f32.mrb[35].mxu0 }
 0x2cd   : > { %v1836_v30 = vpop.eup %1835  ;;  %v1315_v31 = vadd.f32 1.0, %v1834_v25  ;;  %v1227_v32 = vsub.f32 0.0, %v1149_v22  ;;  %v1152_v33 = vadd.f32 %v2270_v61, %v1151_v29 }
 0x2ce   : > { %v1838_v34 = vpop.eup %1837  ;;  %1855 = vrcp.f32 %v1317_v26  ;;  %v1318_v35 = vadd.f32 1.0, %v1836_v30  ;;  %v1279_v36 = vmul.f32 1.442695, %v1229_v27  ;;  %v1230_v37 = vsub.f32 0.0, %v1160_v28 }
 0x2cf   : > { %v1840_v38 = vpop.eup %1839  ;;  %1857 = vrcp.f32 %v1315_v31  ;;  %v1316_v39 = vadd.f32 1.0, %v1838_v34  ;;  %v1275_v40 = vmul.f32 1.442695, %v1227_v32  ;;  %v1228_v41 = vsub.f32 0.0, %v1152_v33 }
 0x2d0   : > { %v1842_v42 = vpop.eup %1841  ;;  %1377 = vst [vmem:[%s2291_s16 + $0x30] sm:$0xff] %v1840_v38  ;;  %1859 = vrcp.f32 %v1318_v35  ;;  %v1281_v43 = vmul.f32 1.442695, %v1230_v37 }
 0x2d1   : > { %v1844_v44 = vpop.eup %1843  ;;  %1375 = vst [vmem:[%s2291_s16 + $0x20] sm:$0xff] %v1842_v42  ;;  %1861 = vrcp.f32 %v1316_v39  ;;  %v1277_v45 = vmul.f32 1.442695, %v1228_v41  ;;  %v1729_v46 = vpop.f32.mrb[36].mxu0 }
 0x2d2   : > { %v1846_v47 = vpop.eup %1845  ;;  %1378 = vst [vmem:[%s2291_s16 + $0x38] sm:$0xff] %v1844_v44  ;;  %1863 = vpow2.f32 %v1279_v36  ;;  %v1173_v48 = vadd.f32 %v1729_v46, %v2270_v61  ;;  %v1164_v49 = vpop.f32.mrb[37].mxu0 }
 0x2d3   : > { %v1848_v50 = vpop.eup %1847  ;;  %1376 = vst [vmem:[%s2291_s16 + $0x28] sm:$0xff] %v1846_v47  ;;  %1865 = vpow2.f32 %v1275_v40  ;;  %v1165_v51 = vadd.f32 %v2270_v61, %v1164_v49  ;;  %v1730_v52 = vpop.f32.mrb[38].mxu0 }
 0x2d4   : > { %v1850_v53 = vpop.eup %1849  ;;  %v1321_v54 = vadd.f32 1.0, %v1848_v50  ;;  %1867 = vpow2.f32 %v1281_v43  ;;  %v1233_v55 = vsub.f32 0.0, %v1173_v48  ;;  %v1176_v56 = vadd.f32 %v1730_v52, %v2270_v61  ;;  %v1167_v57 = vpop.f32.mrb[39].mxu0 }
 0x2d5   : > { %v1852_v58 = vpop.eup %1851  ;;  %v1319_v59 = vadd.f32 1.0, %v1850_v53  ;;  %1869 = vpow2.f32 %v1277_v45  ;;  %v1231_v60 = vsub.f32 0.0, %v1165_v51  ;;  %v1168_v62 = vadd.f32 %v2270_v61, %v1167_v57 }
 0x2d6   : > { %v1854_v63 = vpop.eup %1853  ;;  %1871 = vrcp.f32 %v1321_v54  ;;  %v1322_v1 = vadd.f32 1.0, %v1852_v58  ;;  %v1287_v0 = vmul.f32 1.442695, %v1233_v55  ;;  %v1234_v2 = vsub.f32 0.0, %v1176_v56 }
 0x2d7   : > { %1873 = vrcp.f32 %v1319_v59  ;;  %v1320_v4 = vadd.f32 1.0, %v1854_v63  ;;  %v1283_v5 = vmul.f32 1.442695, %v1231_v60  ;;  %v1232_v6 = vsub.f32 0.0, %v1168_v62 }
 0x2d8   : > { %v1856_v7 = vpop.eup %1855  ;;  %1875 = vrcp.f32 %v1322_v1  ;;  %v1289_v8 = vmul.f32 1.442695, %v1234_v2 }
 0x2d9   : > { %v1858_v9 = vpop.eup %1857  ;;  %1381 = vst [vmem:[%s2291_s16 + $0x50] sm:$0xff] %v1856_v7  ;;  %1877 = vrcp.f32 %v1320_v4  ;;  %v1285_v10 = vmul.f32 1.442695, %v1232_v6  ;;  %v1733_v11 = vpop.f32.mrb[40].mxu0 }
 0x2da   : > { %v1860_v24 = vpop.eup %1859  ;;  %1379 = vst [vmem:[%s2291_s16 + $0x40] sm:$0xff] %v1858_v9  ;;  %1879 = vpow2.f32 %v1287_v0  ;;  %v1189_v3 = vadd.f32 %v1733_v11, %v2270_v61  ;;  %v1180_v12 = vpop.f32.mrb[41].mxu0 }
 0x2db   : > { %v1862_v13 = vpop.eup %1861  ;;  %1382 = vst [vmem:[%s2291_s16 + $0x58] sm:$0xff] %v1860_v24  ;;  %1881 = vpow2.f32 %v1283_v5  ;;  %v1181_v14 = vadd.f32 %v2270_v61, %v1180_v12  ;;  %v1734_v15 = vpop.f32.mrb[42].mxu0 }
 0x2dc   : > { %v1864_v16 = vpop.eup %1863  ;;  %1380 = vst [vmem:[%s2291_s16 + $0x48] sm:$0xff] %v1862_v13  ;;  %1883 = vpow2.f32 %v1289_v8  ;;  %v1237_v17 = vsub.f32 0.0, %v1189_v3  ;;  %v1192_v18 = vadd.f32 %v1734_v15, %v2270_v61  ;;  %v1183_v19 = vpop.f32.mrb[43].mxu0 }
 0x2dd   : > { %v1866_v20 = vpop.eup %1865  ;;  %v1325_v21 = vadd.f32 1.0, %v1864_v16  ;;  %1885 = vpow2.f32 %v1285_v10  ;;  %v1235_v22 = vsub.f32 0.0, %v1181_v14  ;;  %v1184_v23 = vadd.f32 %v2270_v61, %v1183_v19 }
 0x2de   : > { %v1868_v25 = vpop.eup %1867  ;;  %v1323_v26 = vadd.f32 1.0, %v1866_v20  ;;  %v1238_v27 = vsub.f32 0.0, %v1192_v18  ;;  %v1295_v30 = vmul.f32 1.442695, %v1237_v17 }
 0x2df   : > { %v1870_v28 = vpop.eup %1869  ;;  %1887 = vrcp.f32 %v1325_v21  ;;  %v1326_v29 = vadd.f32 1.0, %v1868_v25  ;;  %v1236_v31 = vsub.f32 0.0, %v1184_v23  ;;  %v1291_v34 = vmul.f32 1.442695, %v1235_v22 }
 0x2e0   : > { %v1872_v32 = vpop.eup %1871  ;;  %1889 = vrcp.f32 %v1323_v26  ;;  %v1324_v33 = vadd.f32 1.0, %v1870_v28  ;;  %v1297_v36 = vmul.f32 1.442695, %v1238_v27 }
 0x2e1   : > { %v1874_v35 = vpop.eup %1873  ;;  %1385 = vst [vmem:[%s2291_s16 + $0x70] sm:$0xff] %v1872_v32  ;;  %1891 = vrcp.f32 %v1326_v29  ;;  %v1737_v37 = vpop.f32.mrb[44].mxu0  ;;  %v1293_v39 = vmul.f32 1.442695, %v1236_v31 }
 0x2e2   : > { %v1876_v38 = vpop.eup %1875  ;;  %1383 = vst [vmem:[%s2291_s16 + $0x60] sm:$0xff] %v1874_v35  ;;  %1893 = vrcp.f32 %v1324_v33  ;;  %v1205_v40 = vadd.f32 %v1737_v37, %v2270_v61  ;;  %v1196_v41 = vpop.f32.mrb[45].mxu0 }
 0x2e3   : > { %v1878_v42 = vpop.eup %1877  ;;  %1386 = vst [vmem:[%s2291_s16 + $0x78] sm:$0xff] %v1876_v38  ;;  %1895 = vpow2.f32 %v1295_v30  ;;  %v1197_v43 = vadd.f32 %v2270_v61, %v1196_v41  ;;  %v1738_v44 = vpop.f32.mrb[46].mxu0 }
 0x2e4   : > { %v1880_v45 = vpop.eup %1879  ;;  %1384 = vst [vmem:[%s2291_s16 + $0x68] sm:$0xff] %v1878_v42  ;;  %1897 = vpow2.f32 %v1291_v34  ;;  %v1241_v46 = vsub.f32 0.0, %v1205_v40  ;;  %v1208_v47 = vadd.f32 %v1738_v44, %v2270_v61  ;;  %v1199_v48 = vpop.f32.mrb[47].mxu0 }
 0x2e5   : > { %v1882_v49 = vpop.eup %1881  ;;  %v1329_v50 = vadd.f32 1.0, %v1880_v45  ;;  %1899 = vpow2.f32 %v1297_v36  ;;  %v1239_v51 = vsub.f32 0.0, %v1197_v43  ;;  %v1200_v52 = vadd.f32 %v2270_v61, %v1199_v48 }
 0x2e6   : > { %v1884_v53 = vpop.eup %1883  ;;  %v1327_v54 = vadd.f32 1.0, %v1882_v49  ;;  %1901 = vpow2.f32 %v1293_v39  ;;  %v1242_v55 = vsub.f32 0.0, %v1208_v47  ;;  %v1303_v58 = vmul.f32 1.442695, %v1241_v46 }
 0x2e7   : > { %v1886_v56 = vpop.eup %1885  ;;  %1903 = vrcp.f32 %v1329_v50  ;;  %v1330_v57 = vadd.f32 1.0, %v1884_v53  ;;  %v1240_v59 = vsub.f32 0.0, %v1200_v52  ;;  %v1299_v62 = vmul.f32 1.442695, %v1239_v51 }
 0x2e8   : > { %1905 = vrcp.f32 %v1327_v54  ;;  %v1328_v60 = vadd.f32 1.0, %v1886_v56  ;;  %v1305_v1 = vmul.f32 1.442695, %v1242_v55 }
 0x2e9   : > { %v1888_v63 = vpop.eup %1887  ;;  %1907 = vrcp.f32 %v1330_v57  ;;  %v1301_v0 = vmul.f32 1.442695, %v1240_v59 }
 0x2ea   : > { %v1890_v61 = vpop.eup %1889  ;;  %1389 = vst [vmem:[%s2291_s16 + $0x90] sm:$0xff] %v1888_v63  ;;  %1909 = vrcp.f32 %v1328_v60 }
 0x2eb   : > { %v1892_v2 = vpop.eup %1891  ;;  %1387 = vst [vmem:[%s2291_s16 + $0x80] sm:$0xff] %v1890_v61  ;;  %1911 = vpow2.f32 %v1303_v58 }
 0x2ec   : > { %v1894_v4 = vpop.eup %1893  ;;  %1390 = vst [vmem:[%s2291_s16 + $0x98] sm:$0xff] %v1892_v2  ;;  %1913 = vpow2.f32 %v1299_v62 }
 0x2ed   : > { %v1896_v5 = vpop.eup %1895  ;;  %1388 = vst [vmem:[%s2291_s16 + $0x88] sm:$0xff] %v1894_v4  ;;  %1915 = vpow2.f32 %v1305_v1 }
 0x2ee   : > { %v1898_v6 = vpop.eup %1897  ;;  %v1333_v7 = vadd.f32 1.0, %v1896_v5  ;;  %1917 = vpow2.f32 %v1301_v0 }
 0x2ef   : > { %v1900_v8 = vpop.eup %1899  ;;  %v1331_v9 = vadd.f32 1.0, %v1898_v6 }
 0x2f0   : > { %v1902_v10 = vpop.eup %1901  ;;  %1919 = vrcp.f32 %v1333_v7  ;;  %v1334_v11 = vadd.f32 1.0, %v1900_v8 }
 0x2f1   : > { %v1904_v24 = vpop.eup %1903  ;;  %1921 = vrcp.f32 %v1331_v9  ;;  %v1332_v3 = vadd.f32 1.0, %v1902_v10 }
 0x2f2   : > { %v1906_v12 = vpop.eup %1905  ;;  %1393 = vst [vmem:[%s2291_s16 + $0xb0] sm:$0xff] %v1904_v24  ;;  %1923 = vrcp.f32 %v1334_v11 }
 0x2f3   : > { %v1908_v13 = vpop.eup %1907  ;;  %1391 = vst [vmem:[%s2291_s16 + $0xa0] sm:$0xff] %v1906_v12  ;;  %1925 = vrcp.f32 %v1332_v3 }
 0x2f4   : > { %v1910_v14 = vpop.eup %1909  ;;  %1394 = vst [vmem:[%s2291_s16 + $0xb8] sm:$0xff] %v1908_v13 }
 0x2f5   : > { %v1912_v15 = vpop.eup %1911  ;;  %1392 = vst [vmem:[%s2291_s16 + $0xa8] sm:$0xff] %v1910_v14 }
 0x2f6   : > { %v1914_v16 = vpop.eup %1913  ;;  %v1337_v17 = vadd.f32 1.0, %v1912_v15 }
 0x2f7   : > { %v1916_v18 = vpop.eup %1915  ;;  %v1335_v19 = vadd.f32 1.0, %v1914_v16 }
 0x2f8   : > { %v1918_v20 = vpop.eup %1917  ;;  %1927 = vrcp.f32 %v1337_v17  ;;  %v1338_v21 = vadd.f32 1.0, %v1916_v18 }
 0x2f9   : > { %1929 = vrcp.f32 %v1335_v19  ;;  %v1336_v22 = vadd.f32 1.0, %v1918_v20 }
 0x2fa   : > { %v1920_v23 = vpop.eup %1919  ;;  %1931 = vrcp.f32 %v1338_v21 }
 0x2fb   : > { %v1922_v25 = vpop.eup %1921  ;;  %1397 = vst [vmem:[%s2291_s16 + $0xd0] sm:$0xff] %v1920_v23  ;;  %1933 = vrcp.f32 %v1336_v22 }
 0x2fc   : > { %v1924_v26 = vpop.eup %1923  ;;  %1395 = vst [vmem:[%s2291_s16 + $0xc0] sm:$0xff] %v1922_v25 }
 0x2fd   : > { %v1926_v27 = vpop.eup %1925  ;;  %1398 = vst [vmem:[%s2291_s16 + $0xd8] sm:$0xff] %v1924_v26 }
 0x2fe   : > { %1396 = vst [vmem:[%s2291_s16 + $0xc8] sm:$0xff] %v1926_v27 }
 0x302   : > { %v1928_v28 = vpop.eup %1927 }
 0x303   : > { %v1930_v29 = vpop.eup %1929  ;;  %1401 = vst [vmem:[%s2291_s16 + $0xf0] sm:$0xff] %v1928_v28 }
 0x304   : > { %v1932_v30 = vpop.eup %1931  ;;  %1399 = vst [vmem:[%s2291_s16 + $0xe0] sm:$0xff] %v1930_v29 }
 0x305   : > { %v1934_v31 = vpop.eup %1933  ;;  %1402 = vst [vmem:[%s2291_s16 + $0xf8] sm:$0xff] %v1932_v30 }
 0x306   : > { %1400 = vst [vmem:[%s2291_s16 + $0xe8] sm:$0xff] %v1934_v31 }
 0x307   : > { %1948 = shalt.err (!%p1945_p3)
}
 0x308   : > { %s1949_s9 = scalar_lea.hbm %s2343_s21, 4096  ;;  %s1953_s15 = scalar_lea.hbm %s2400_s7, 8192 }
 0x309   : > { %p1950_p4 = scmp.ne.s32.totalorder %s2343_s21, %s1949_s9  ;;  %p1954_p9 = scmp.lt.u32.totalorder %s2343_s21, %s2400_s7 }
 0x30a   : > { %p1955_p10 = scmp.lt.u32.totalorder %s1953_s15, %s1949_s9  ;;  %p1957_p12 = scmp.lt.u32.totalorder %s1949_s9, %s2343_s21 }
 0x30b   : > { %p1951_p7 = pnand %p1950_p4, %p2080_p5 }
 0x30c   : > { %p1956_p11 = por %p1955_p10, %p1954_p9 }
 0x30d   : > { %p1952_p8 = pneg %p1951_p7 }
 0x30e   : > { %p1958_p13 = por %p1957_p12, %p1956_p11 }
 0x310   : > { %p1959_p0 = pnand %p1958_p13, %p1952_p8 }
 0x312   : > { %1962 = shalt.err (!%p1959_p0)
}
 0x313   : > { %s2000_s19 = smov 128   ;;  %s2001_s20 = smov 8  }
 0x314   : > { %1741 = dma.vmem_to_hbm [thread:$0]  (%p2080_p5), %s2345_s18, 4096, %s2343_s21, %s2352_s28, %s2000_s19, %s2000_s19, %s2001_s20  }
 0x315 PF: > { %p1747_p1 = scmp.ge.s32.totalorder %s1997_s27, 2  ;;  %s1432_s22 = sand.u32 1, %s1985_s24  }
 0x316   : > { %s1433_s23 = scalar_lea.sflag [#allocation3], %s1432_s22 }
 0x317   : > { %p1744_p2 = pnand %p1747_p1, %p2084_p6 }
 0x319   : > { %1980 = dma.done.wait (!%p1744_p2), %s1433_s23, 4096  }
 0x31a   : > { %1982 = vsyncadd (!%p1744_p2), %s1433_s23, 4294963200  ;;  %p17_p3 = scmp.ge.s32.totalorder %s2067_s30, 4   ;;  %s2403_s24 = smov %s1989_s25 }
 0x31b   : > { %s2404_s25 = smov %s1993_s26  ;;  %s2405_s26 = smov %s2078_s10 }
 0x31c   : > { %s2406_s27 = smov %s2067_s30  ;;  %19 = sbr.rel (!%p17_p3) target bundleno = 3 (0x3), region = 83 }
 0x323   :  { %1438 = vsyncpa [#allocation3], 1 }
 0x324   :  { %1440 = vsyncpa [#allocation3 + $0x1], 1 }

</bundles_post_ra>
